<compile_context>
chip_gen: v5e
topology: v5e:2x2
jax: 0.10.0
libtpu: 0.0.40
codegen_flags: <defaults>
</compile_context>

<pallas_src>
import jax
import jax.numpy as jnp
from jax.experimental import pallas as pl
from jax.experimental.pallas import tpu as pltpu

_GOLDEN = 0x9E3779B9                     # Python int -> literal in the kernel, never a const
_TARGET_TILE_BYTES = 8 * 1024 * 1024     # per-tile output bytes (double-buffered by the pipeline)
_VMEM_LIMIT_BYTES = 32 * 1024 * 1024


def _uniform_kernel(base_ref, o_ref):
    """Fill o_ref with uniform [0,1) noise from a counter hash (shift/xor/add only)."""
    rows, lanes = (int(d) for d in o_ref.shape)
    lane_shift = lanes.bit_length() - 1              # lanes is a power of two
    tile_elems = rows * lanes                        # Python int (< 2**31)

    # Scalar path: per-tile counter base. Seed and stream offset were folded into base_ref on
    # the host, so the vector path only adds one scalar per element.
    base = base_ref[0].astype(jnp.uint32) + pl.program_id(0).astype(jnp.uint32) * tile_elems

    # Vector path: flat per-element counters for this tile.
    row = jax.lax.broadcasted_iota(jnp.int32, (rows, lanes), 0)
    lane = jax.lax.broadcasted_iota(jnp.int32, (rows, lanes), 1)
    x = ((row << lane_shift) | lane).astype(jnp.uint32) + base

    # Mixer: one xorshift32 round + odd-multiplier carry spread + avalanche fold.
    # TODO(synk): weak (mostly GF(2)-linear) generator; fine for mock spike noise only.
    x = x ^ (x << 13)
    x = x ^ (x >> 17)
    x = x ^ (x << 5)
    x = x + (x << 17)
    x = x ^ (x >> 13)

    # Bits -> uniform [0,1): keep only as many mantissa bits as the output dtype holds so the
    # narrowing cast is exact (never rounds up to 1.0; no clamp needed).
    mbits = min(23, jnp.finfo(o_ref.dtype).nmant)
    mant = x >> (32 - mbits)
    if mbits < 23:
        mant = mant << (23 - mbits)
    u = jax.lax.bitcast_convert_type(mant | 0x3F800000, jnp.float32) - 1.0
    o_ref[...] = u.astype(o_ref.dtype)


def _pick_tile_rows(rows, sub, max_tile_rows):
    """Largest divisor of `rows` that is a multiple of `sub`, <= max_tile_rows, and leaves a
    grid of >= 2 steps when the slab holds more than one minimal tile (v7x megacore)."""
    if rows <= sub:
        return rows
    cap = min(max_tile_rows, rows)
    if rows >= 2 * sub:
        cap = min(cap, max(sub, (rows // 2) // sub * sub))
    t = max(sub, cap // sub * sub)
    while t > sub and rows % t:
        t -= sub
    return t


def _uniform_slab(rows, lanes, tile_rows, dtype, base_u32):
    grid = rows // tile_rows
    base_i32 = base_u32 & 0xFFFFFFFF
    if base_i32 >= 1 << 31:
        base_i32 -= 1 << 32
    base = jnp.asarray([base_i32], dtype=jnp.int32)
    return pl.pallas_call(
        _uniform_kernel,
        out_shape=jax.ShapeDtypeStruct((rows, lanes), dtype),
        grid_spec=pltpu.PrefetchScalarGridSpec(
            num_scalar_prefetch=1,
            grid=(grid,),
            in_specs=[],
            out_specs=pl.BlockSpec((tile_rows, lanes), lambda i, base_ref: (i, 0)),
        ),
        compiler_params=pltpu.CompilerParams(
            dimension_semantics=("parallel",),       # independent tiles: megacore-safe
            vmem_limit_bytes=_VMEM_LIMIT_BYTES,
        ),
        cost_estimate=pl.CostEstimate(
            flops=20 * rows * lanes,
            transcendentals=0,
            bytes_accessed=rows * lanes * jnp.dtype(dtype).itemsize,
        ),
    )(base)


def _pallas_uniform(shape, dtype, base_u32):
    """Uniform [0,1) array of `shape`/`dtype`. Returns (array, counters_consumed)."""
    dtype = jnp.dtype(dtype)
    total = 1
    for s in shape:
        total *= int(s)
    itemsize = dtype.itemsize
    sub = max(8, 32 // itemsize)                     # native sublane multiple for this dtype

    def max_rows(lanes):
        return max(sub, _TARGET_TILE_BYTES // (lanes * itemsize) // sub * sub)

    # Fast path A: lane-dense slab with sublane-aligned rows -> exact-size output (the kernel
    # write is the only HBM pass) and a tileable grid.
    for lanes in (1024, 512, 256, 128):
        if total % lanes == 0 and (total // lanes) % sub == 0:
            rows = total // lanes
            tile_rows = _pick_tile_rows(rows, sub, max_rows(lanes))
            slab = _uniform_slab(rows, lanes, tile_rows, dtype, base_u32)
            return slab.reshape(shape), total

    # Fast path B: small slab whose row count is not sublane-aligned -> one full block
    # (block dims equal to the full array dims are always legal).
    for lanes in (1024, 512, 256, 128):
        if total % lanes == 0 and total // lanes <= max_rows(lanes):
            rows = total // lanes
            slab = _uniform_slab(rows, lanes, rows, dtype, base_u32)
            return slab.reshape(shape), total

    # Fallback: awkward element counts (not a multiple of 128, or huge + misaligned) -> pad
    # the slab and slice. Rare for NN-shaped tensors.
    # TODO(synk): mask the tail store in-kernel instead of slicing the padded slab.
    lanes = 128
    rows = -(-total // lanes)
    rows = -(-rows // sub) * sub
    tile_rows = _pick_tile_rows(rows, sub, max_rows(lanes))
    slab = _uniform_slab(rows, lanes, tile_rows, dtype, base_u32)
    return slab.reshape(-1)[:total].reshape(shape), rows * lanes


def mock_spikes_forward(V, delay, seed=0):
    """Pallas version of Mock_Spikes.forward: returns (X, Xd).

    X  = rand_like(V)           -> V's shape and dtype
    Xd = rand(delay, *V.shape)  -> float32 (torch.rand default dtype)
    """
    # TODO(synk): the module's register_buffer / reset() state is host-side bookkeeping with
    # no Pallas analogue; forward just returns freshly drawn noise, as the reference does.
    shape = tuple(int(s) for s in V.shape)
    base = (int(seed) * _GOLDEN + 1) & 0xFFFFFFFF
    X, used = _pallas_uniform(shape, V.dtype, base)
    # Xd draws from the counter range directly after the one X consumed -> disjoint streams
    # even when the fallback path pads (consumed count, not logical size, advances the base).
    Xd, _ = _pallas_uniform((delay,) + shape, jnp.float32, (base + used) & 0xFFFFFFFF)
    return X, Xd


if __name__ == "__main__":
    key = jax.random.PRNGKey(0)
    B, C, H, W = 2, 4, 16, 16   # NCHW, small shapes
    delay = 3
    V = jax.random.normal(key, (B, C, H, W), dtype=jnp.float32)

    X, Xd = mock_spikes_forward(V, delay, seed=0)
    X, Xd = jax.block_until_ready((X, Xd))

    assert X.shape == V.shape and X.dtype == V.dtype
    assert Xd.shape == (delay,) + V.shape and Xd.dtype == jnp.float32
    assert bool(jnp.all(X >= 0.0)) and bool(jnp.all(X < 1.0))
    assert bool(jnp.all(Xd >= 0.0)) and bool(jnp.all(Xd < 1.0))
    # Independent streams: X and the first slice of Xd must not be identical.
    assert not bool(jnp.allclose(X, Xd[0]))
    print("KERNEL_OK")
</pallas_src>

<mosaic_0001>
module attributes {stable_mosaic.version = 11 : i64} {
  func.func @_uniform_kernel(%arg0: i32, %arg1: memref<1xi32, #tpu.memory_space<smem>>, %arg2: memref<8x256xf32, #tpu.memory_space<vmem>>) attributes {dimension_semantics = [#tpu.dimension_semantics<parallel>], iteration_bounds = array<i64: 1>, scalar_prefetch = 1 : i64, scratch_operands = 0 : i64, tpu.core_type = #tpu.core_type<tc>, window_params = [{transform_indices = @transform_0, window_bounds = array<i64: 8, 256>}]} {
    %c0 = arith.constant 0 : index
    %0 = memref.load %arg1[%c0] : memref<1xi32, #tpu.memory_space<smem>>
    %c2048_i32 = arith.constant 2048 : i32
    %1 = arith.muli %arg0, %c2048_i32 : i32
    %2 = arith.addi %0, %1 : i32
    %3 = tpu.iota {dimensions = array<i32: 0>} : vector<8x256xi32>
    %4 = tpu.iota {dimensions = array<i32: 1>} : vector<8x256xi32>
    %c8_i32 = arith.constant 8 : i32
    %5 = vector.broadcast %c8_i32 : i32 to vector<8x256xi32>
    %6 = arith.shli %3, %5 : vector<8x256xi32>
    %7 = arith.ori %6, %4 : vector<8x256xi32>
    %8 = vector.broadcast %2 : i32 to vector<8x256xi32>
    %9 = arith.addi %7, %8 : vector<8x256xi32>
    %c13_i32 = arith.constant 13 : i32
    %10 = vector.broadcast %c13_i32 : i32 to vector<8x256xi32>
    %11 = arith.shli %9, %10 : vector<8x256xi32>
    %12 = arith.xori %9, %11 : vector<8x256xi32>
    %c17_i32 = arith.constant 17 : i32
    %13 = vector.broadcast %c17_i32 : i32 to vector<8x256xi32>
    %14 = arith.shrui %12, %13 : vector<8x256xi32>
    %15 = arith.xori %12, %14 : vector<8x256xi32>
    %c5_i32 = arith.constant 5 : i32
    %16 = vector.broadcast %c5_i32 : i32 to vector<8x256xi32>
    %17 = arith.shli %15, %16 : vector<8x256xi32>
    %18 = arith.xori %15, %17 : vector<8x256xi32>
    %c17_i32_0 = arith.constant 17 : i32
    %19 = vector.broadcast %c17_i32_0 : i32 to vector<8x256xi32>
    %20 = arith.shli %18, %19 : vector<8x256xi32>
    %21 = arith.addi %18, %20 : vector<8x256xi32>
    %c13_i32_1 = arith.constant 13 : i32
    %22 = vector.broadcast %c13_i32_1 : i32 to vector<8x256xi32>
    %23 = arith.shrui %21, %22 : vector<8x256xi32>
    %24 = arith.xori %21, %23 : vector<8x256xi32>
    %c9_i32 = arith.constant 9 : i32
    %25 = vector.broadcast %c9_i32 : i32 to vector<8x256xi32>
    %26 = arith.shrui %24, %25 : vector<8x256xi32>
    %c1065353216_i32 = arith.constant 1065353216 : i32
    %27 = vector.broadcast %c1065353216_i32 : i32 to vector<8x256xi32>
    %28 = arith.ori %26, %27 : vector<8x256xi32>
    %29 = tpu.bitcast %28 : vector<8x256xi32> -> vector<8x256xf32>
    %cst = arith.constant 1.000000e+00 : f32
    %30 = vector.broadcast %cst : f32 to vector<8x256xf32>
    %31 = arith.subf %29, %30 : vector<8x256xf32>
    %c0_2 = arith.constant 0 : index
    %c0_3 = arith.constant 0 : index
    %32 = vector.load %arg2[%c0_2, %c0_3] : memref<8x256xf32, #tpu.memory_space<vmem>>, vector<8x256xf32>
    tpu.vector_store %arg2[%c0_2, %c0_3], %31 {strides = array<i32>} : memref<8x256xf32, #tpu.memory_space<vmem>>, vector<8x256xf32>,
    return
  }
  func.func @transform_0(%arg0: i32, %arg1: memref<1xi32, #tpu.memory_space<smem>>) -> (i32, i32) {
    %c0_i32 = arith.constant 0 : i32
    %c0_i32_0 = arith.constant 0 : i32
    return %arg0, %c0_i32 : i32, i32
  }
}

</mosaic_0001>

<bundles_post_ra>
// kernel: tpu_custom_call.1
= control target key start
LH: loop header
LB: loop body
LE: loop exit
PB: predicated region body
PF: predicated region fallthrough
CT: control target
= control target key end

     0   :  { %v11_v0 = vlaneseq  ;;  %s114_s0 = inlined_call_operand.<no memory space> [shape: s32[1], index: 0, kind: input, shape index: {}]   ;;  %s115_s1 = inlined_call_operand.hbm [shape: f32[8,256], index: 1, kind: output, shape index: {}]  }
   0x1   :  { %7 = vsyncpa [#allocation5], 0  ;;  %v19_v5 = vstv %s114_s0  ;;  %s97_s0 = smov [#allocation4]   ;;  %s59_s11 = sshll.u32 %s115_s1, 4  ;;  %s60_s11 = int_to_ptr.hbm [resolvable:$true] %s59_s11 }
   0x2   :  { %v12_v1 = vshrl.u32 %v11_v0, 7  ;;  %v14_v2 = vand.u32 127, %v11_v0  ;;  %s57_s8 = sshll.u32 %s97_s0, 4  ;;  %s58_s8 = int_to_ptr.vmem [resolvable:$true] %s57_s8 }
   0x4   :  { %v16_v3 = vshll.u32 %v12_v1, 8  ;;  %v15_v4 = vadd.s32 128, %v14_v2 }
   0x6   :  { %v17_v6 = vor.u32 %v16_v3, %v14_v2  ;;  %v18_v7 = vor.u32 %v16_v3, %v15_v4 }
   0x8   :  { %v20_v8 = vadd.s32 %v19_v5, %v17_v6  ;;  %v21_v9 = vadd.s32 %v19_v5, %v18_v7 }
   0xa   :  { %v22_v10 = vshll.u32 %v20_v8, 13  ;;  %v23_v11 = vshll.u32 %v21_v9, 13 }
   0xc   :  { %v24_v12 = vxor.u32 %v22_v10, %v20_v8  ;;  %v25_v13 = vxor.u32 %v23_v11, %v21_v9 }
   0xe   :  { %v26_v14 = vshrl.u32 %v24_v12, 17  ;;  %v27_v15 = vshrl.u32 %v25_v13, 17 }
  0x10   :  { %v28_v16 = vxor.u32 %v26_v14, %v24_v12  ;;  %v29_v17 = vxor.u32 %v27_v15, %v25_v13 }
  0x12   :  { %v30_v18 = vshll.u32 %v28_v16, 5  ;;  %v31_v19 = vshll.u32 %v29_v17, 5 }
  0x14   :  { %v32_v20 = vxor.u32 %v30_v18, %v28_v16  ;;  %v33_v21 = vxor.u32 %v31_v19, %v29_v17 }
  0x16   :  { %v34_v22 = vshll.u32 %v32_v20, 17  ;;  %v35_v23 = vshll.u32 %v33_v21, 17 }
  0x18   :  { %v36_v24 = vadd.s32 %v34_v22, %v32_v20  ;;  %v37_v25 = vadd.s32 %v35_v23, %v33_v21 }
  0x1a   :  { %v38_v26 = vshrl.u32 %v36_v24, 13  ;;  %v39_v27 = vshrl.u32 %v37_v25, 13 }
  0x1c   :  { %v40_v28 = vxor.u32 %v38_v26, %v36_v24  ;;  %v41_v29 = vxor.u32 %v39_v27, %v37_v25 }
  0x1e   :  { %v42_v30 = vshrl.u32 %v40_v28, 9  ;;  %v43_v31 = vshrl.u32 %v41_v29, 9 }
  0x20   :  { %v44_v32 = vor.u32 1065353216, %v42_v30  ;;  %v45_v33 = vor.u32 1065353216, %v43_v31 }
  0x22   :  { %v68_v34 = vadd.f32 -1.0, %v44_v32  ;;  %v69_v35 = vadd.f32 -1.0, %v45_v33 }
  0x24   :  { %50 = vst [vmem:[#allocation4] sm:$0xff] %v68_v34 }
  0x25   :  { %51 = vst [vmem:[#allocation4 + $0x8] sm:$0xff] %v69_v35 }
  0x26   :  { %62 = dma.vmem_to_hbm [thread:$0]  %s58_s8, 256, %s60_s11, [#allocation5]  }
  0x27   :  { %95 = dma.done.wait [#allocation5], 256  }
  0x28   :  { %96 = vsyncadd [#allocation5], 4294967040 }
  0x29   :  { %67 = vsyncpa [#allocation5], 1 }

</bundles_post_ra>
